<compile_context>
chip_gen: v5e
topology: v5e:2x2
jax: 0.10.0
libtpu: 0.0.40
codegen_flags: <defaults>
</compile_context>

<pallas_src>
import functools

import jax
import jax.numpy as jnp
from jax import lax
from jax.experimental import pallas as pl
from jax.experimental.pallas import tpu as pltpu


def _taylor_ce_kernel(logits_ref, labels_ref, loss_ref, cnt_ref,
                      denom_acc, picked_acc, *,
                      n: int, ignore_index: int, num_classes: int,
                      class_tile: int, num_class_chunks: int,
                      tiles_per_chunk: int, num_row_tiles: int):
    """Grid = (parallel_chunk, batch_tile, class_chunk).  Accumulates
    sum(-log_prob[label]) and the valid-sample count into the per-chunk
    (8, 128) output blocks (every element of a block carries the total)."""
    p = pl.program_id(0)   # parallel chunk (one per TensorCore on v7x)
    i = pl.program_id(1)   # batch-tile axis within the chunk ("arbitrary")
    j = pl.program_id(2)   # class-chunk axis ("arbitrary", innermost)
    tile_id = p * tiles_per_chunk + i

    # Zero this chunk's output accumulators on its very first grid step.
    # Unconditional (not gated on tile validity) so chunks that own no real
    # batch tiles still hand back zeros to the wrapper.
    @pl.when(jnp.logical_and(i == 0, j == 0))
    def _():
        loss_ref[...] = jnp.zeros_like(loss_ref)
        cnt_ref[...] = jnp.zeros_like(cnt_ref)

    # Per-row partial sums carried across the class-chunk axis.
    @pl.when(j == 0)
    def _():
        denom_acc[...] = jnp.zeros_like(denom_acc)
        picked_acc[...] = jnp.zeros_like(picked_acc)

    # Skip grid steps whose (clamped) batch tile is a duplicate past the end
    # of the batch (only happens when n_row_tiles % num_chunks != 0).
    @pl.when(tile_id < num_row_tiles)
    def _():
        x = logits_ref[...].astype(jnp.float32)              # (TB, TC)

        # Taylor expansion of exp: fn = 1 + x + x^2/2! + ... + x^n/n!
        # Constant multiplies only (stays on the VALU); the single EUP slot
        # stays free for the two logs per row at the end.
        fn = 1.0 + x
        xp = x
        denor = 1.0
        for k in range(2, n + 1):
            denor *= float(k)
            xp = xp * x
            fn = fn + xp * (1.0 / denor)

        labels = labels_ref[...]                              # (TB, 1) int32
        col = lax.broadcasted_iota(jnp.int32, x.shape, 1) + j * class_tile

        if num_class_chunks * class_tile != num_classes:
            # Ragged last class chunk: lanes >= num_classes hold garbage
            # (the logits stream unpadded from HBM), mask them out of the
            # denominator.  Traced in only when C % class_tile != 0.
            fn_for_denom = jnp.where(col < num_classes, fn, 0.0)
        else:
            fn_for_denom = fn

        denom_acc[...] += jnp.sum(fn_for_denom, axis=-1, keepdims=True)
        # Gather fn at the label via a masked lane reduce (no MXU needed).
        picked_acc[...] += jnp.sum(jnp.where(col == labels, fn, 0.0),
                                   axis=-1, keepdims=True)

        @pl.when(j == num_class_chunks - 1)
        def _():
            valid = labels != ignore_index                    # (TB, 1)
            picked = picked_acc[...]
            # picked > 0 guards labels outside [0, C): they contribute 0 loss
            # but still count as valid (PyTorch would raise instead).
            use = jnp.logical_and(valid, picked > 0.0)
            # Only 2 transcendentals per row: log(picked) - log(denom).
            logp = (jnp.log(jnp.where(use, picked, 1.0))
                    - jnp.log(denom_acc[...]))
            tile_loss = jnp.sum(jnp.where(use, -logp, 0.0),
                                axis=(0, 1), keepdims=True)   # (1, 1)
            tile_cnt = jnp.sum(valid.astype(jnp.float32),
                               axis=(0, 1), keepdims=True)    # (1, 1)
            loss_ref[...] += jnp.broadcast_to(tile_loss, loss_ref.shape)
            cnt_ref[...] += jnp.broadcast_to(tile_cnt, cnt_ref.shape)


def _round_up(x: int, m: int) -> int:
    return ((x + m - 1) // m) * m


def _default_vmem_limit_bytes() -> int:
    try:
        cap = int(pltpu.get_tpu_info().vmem_capacity_bytes)
        return (cap * 3) // 4            # ~96 MiB on v5e/v6e, ~48 MiB on v7x
    except Exception:
        return 48 * 1024 * 1024          # safe on every generation


def _num_tensorcores() -> int:
    """Best-effort TensorCore count (2 on v7x, 1 on v5e/v6e)."""
    try:
        info = pltpu.get_tpu_info()
        for attr in ("num_cores", "core_count", "num_tensorcores",
                     "tensor_cores_per_chip", "cores_per_chip"):
            v = getattr(info, attr, None)
            if isinstance(v, int) and 1 <= v <= 16:
                return v
    except Exception:
        pass
    # Fallback: 2 is harmless on single-TC chips (the extra chunk just runs
    # sequentially) and captures the megacore win on v7x.
    return 2


def taylor_cross_entropy_loss_v1(logits, labels, *, n=2, ignore_index=-1,
                                 reduction="mean", batch_tile=None,
                                 class_tile=None, num_parallel_chunks=None,
                                 vmem_limit_bytes=None):
    """JAX/Pallas equivalent of TaylorCrossEntropyLossV1.forward.

    logits: (N, C) float (f32 or bf16; bf16 halves HBM traffic, math stays f32)
    labels: (N,)   int, values in [0, C) or == ignore_index
    """
    assert n % 2 == 0 and n > 0
    N, C = logits.shape
    itemsize = jnp.dtype(logits.dtype).itemsize

    if vmem_limit_bytes is None:
        vmem_limit_bytes = _default_vmem_limit_bytes()

    # ---- class-axis chunking (lane axis) -------------------------------------
    # Small/medium C: one full-C block (allowed even when C % 128 != 0), so the
    # logits stream straight from HBM with no padding copy and no per-element
    # class mask.  Vocab-scale C: lane-dense 2k chunks with per-row partial
    # denom/picked carried in VMEM scratch.
    if class_tile is None:
        class_tile = C if C <= 8192 else 2048
    if class_tile != C:
        assert class_tile % 128 == 0, "class_tile must be a multiple of 128"
    n_class_chunks = pl.cdiv(C, class_tile)

    # ---- batch tile from a VMEM budget ---------------------------------------
    # Count the double-buffered logits block *and* the f32 temporaries the
    # kernel materializes (x, xp, fn, col, selects ~ 6 tiles); cap at 512 rows
    # (512-row tiles already reach ~85% of the HBM roofline).
    if batch_tile is None:
        per_row_bytes = 2 * class_tile * itemsize + 6 * class_tile * 4 + 256
        budget = (int(vmem_limit_bytes) * 6) // 10
        max_rows = max(8, budget // per_row_bytes)
        batch_tile = int(min(512, (max_rows // 8) * 8))
        batch_tile = max(8, min(batch_tile, _round_up(N, 8)))
    assert batch_tile % 8 == 0 and batch_tile >= 8, \
        "batch_tile must be a multiple of 8 (f32 sublane / (8,128) rule)"

    n_tiles = pl.cdiv(N, batch_tile)

    if num_parallel_chunks is None:
        P = max(1, min(_num_tensorcores(), n_tiles))
    else:
        P = max(1, int(num_parallel_chunks))
    inner = pl.cdiv(n_tiles, P)

    # ---- pad only the labels (tiny); the logits are streamed unpadded --------
    # Rows >= N of the last batch tile read unspecified logits; their padded
    # ignore_index labels mask them out of both the loss and the count.
    labels_rows = n_tiles * batch_tile
    labels2d = jnp.pad(labels.astype(jnp.int32), (0, labels_rows - N),
                       constant_values=ignore_index)[:, None]

    def logits_map(p, i, j):
        t = jnp.minimum(p * inner + i, n_tiles - 1)   # clamp duplicate tail tiles
        return (t, j)

    def labels_map(p, i, j):
        t = jnp.minimum(p * inner + i, n_tiles - 1)
        return (t, 0)

    kernel = functools.partial(
        _taylor_ce_kernel, n=n, ignore_index=ignore_index, num_classes=C,
        class_tile=class_tile, num_class_chunks=n_class_chunks,
        tiles_per_chunk=inner, num_row_tiles=n_tiles)

    cost = pl.CostEstimate(
        flops=int((n + 6) * N * C),
        transcendentals=int(2 * N),
        bytes_accessed=int(N * C * itemsize + labels_rows * 4
                           + 2 * P * 8 * 128 * 4))

    loss_out, cnt_out = pl.pallas_call(
        kernel,
        out_shape=(jax.ShapeDtypeStruct((P * 8, 128), jnp.float32),
                   jax.ShapeDtypeStruct((P * 8, 128), jnp.float32)),
        grid_spec=pltpu.PrefetchScalarGridSpec(
            num_scalar_prefetch=0,
            grid=(P, inner, n_class_chunks),
            in_specs=[
                pl.BlockSpec((batch_tile, class_tile), logits_map),
                pl.BlockSpec((batch_tile, 1), labels_map),
            ],
            out_specs=(
                pl.BlockSpec((8, 128), lambda p, i, j: (p, 0)),
                pl.BlockSpec((8, 128), lambda p, i, j: (p, 0)),
            ),
            scratch_shapes=[pltpu.VMEM((batch_tile, 1), jnp.float32),
                            pltpu.VMEM((batch_tile, 1), jnp.float32)],
        ),
        compiler_params=pltpu.CompilerParams(
            dimension_semantics=("parallel", "arbitrary", "arbitrary"),
            vmem_limit_bytes=int(vmem_limit_bytes)),
        cost_estimate=cost,
    )(logits, labels2d)

    # Every element of a chunk's (8,128) block carries the chunk total; take one.
    total = jnp.sum(loss_out.reshape(P, 8, 128)[:, 0, 0])
    cnt = jnp.sum(cnt_out.reshape(P, 8, 128)[:, 0, 0])

    if reduction == "mean":
        # NaN if every label is ignore_index (matches PyTorch behaviour).
        return total / cnt
    elif reduction == "sum":
        return total
    else:
        raise NotImplementedError(
            "reduction='none' not supported by the scalar-accumulating kernel")
        # TODO(synk): reduction='none' would need a per-sample (N, 1) out_spec.


def _reference(logits, labels, n=2, ignore_index=-1):
    """Pure-JAX reference mirroring the PyTorch code, for sanity checking."""
    x = logits.astype(jnp.float32)
    fn = jnp.ones_like(x)
    denor = 1.0
    for k in range(1, n + 1):
        denor *= k
        fn = fn + x ** k / denor
    out = fn / jnp.sum(fn, axis=1, keepdims=True)
    logp = jnp.log(out)
    valid = labels != ignore_index
    safe_labels = jnp.where(valid, labels, 0)
    picked = jnp.take_along_axis(logp, safe_labels[:, None], axis=1)[:, 0]
    losses = jnp.where(valid, -picked, 0.0)
    return jnp.sum(losses) / jnp.sum(valid.astype(jnp.float32))


if __name__ == "__main__":
    key = jax.random.PRNGKey(0)
    k1, k2, k3, k4, k5, k6 = jax.random.split(key, 6)

    # Test 1: small aligned shape; single batch tile, single class chunk.
    N, C = 8, 32
    logits = jax.random.normal(k1, (N, C), dtype=jnp.float32)
    labels = jax.random.randint(k2, (N,), 0, C, dtype=jnp.int32)
    labels = labels.at[3].set(-1)  # exercise ignore_index handling
    loss = taylor_cross_entropy_loss_v1(logits, labels, n=2,
                                        ignore_index=-1, reduction="mean")
    loss = jax.block_until_ready(loss)
    ref = _reference(logits, labels, n=2, ignore_index=-1)
    assert jnp.allclose(loss, ref, atol=1e-5, rtol=1e-5), (loss, ref)

    # Test 2: C not a multiple of 128, N not a multiple of the batch tile, two
    # "parallel" chunks (exercises the clamped duplicate-tile skip and the
    # garbage tail-row masking, all without any logits padding copy).
    N2, C2 = 21, 37
    logits2 = jax.random.normal(k3, (N2, C2), dtype=jnp.float32)
    labels2 = jax.random.randint(k4, (N2,), 0, C2, dtype=jnp.int32)
    labels2 = labels2.at[5].set(-1)
    loss2 = taylor_cross_entropy_loss_v1(logits2, labels2, n=2,
                                         ignore_index=-1, reduction="mean",
                                         batch_tile=8, num_parallel_chunks=2)
    loss2 = jax.block_until_ready(loss2)
    ref2 = _reference(logits2, labels2, n=2, ignore_index=-1)
    assert jnp.allclose(loss2, ref2, atol=1e-5, rtol=1e-5), (loss2, ref2)

    # Test 3: class-chunked (vocab-style) path: 2 class chunks with a ragged
    # last chunk, per-row partial sums carried in VMEM scratch, n=4 polynomial.
    N3, C3 = 16, 200
    logits3 = jax.random.normal(k5, (N3, C3), dtype=jnp.float32)
    labels3 = jax.random.randint(k6, (N3,), 0, C3, dtype=jnp.int32)
    labels3 = labels3.at[0].set(-1)
    loss3 = taylor_cross_entropy_loss_v1(logits3, labels3, n=4,
                                         ignore_index=-1, reduction="mean",
                                         class_tile=128)
    loss3 = jax.block_until_ready(loss3)
    ref3 = _reference(logits3, labels3, n=4, ignore_index=-1)
    assert jnp.allclose(loss3, ref3, atol=1e-5, rtol=1e-5), (loss3, ref3)

    print("KERNEL_OK")
</pallas_src>

<mosaic_0001>
module attributes {stable_mosaic.version = 11 : i64} {
  func.func @_taylor_ce_kernel(%arg0: i32, %arg1: i32, %arg2: i32, %arg3: memref<8x32xf32, #tpu.memory_space<vmem>>, %arg4: memref<8x1xi32, #tpu.memory_space<vmem>>, %arg5: memref<8x128xf32, #tpu.memory_space<vmem>>, %arg6: memref<8x128xf32, #tpu.memory_space<vmem>>, %arg7: memref<8x1xf32, #tpu.memory_space<vmem>>, %arg8: memref<8x1xf32, #tpu.memory_space<vmem>>) attributes {dimension_semantics = [#tpu.dimension_semantics<parallel>, #tpu.dimension_semantics<arbitrary>, #tpu.dimension_semantics<arbitrary>], iteration_bounds = array<i64: 1, 1, 1>, scalar_prefetch = 0 : i64, scratch_operands = 2 : i64, tpu.core_type = #tpu.core_type<tc>, window_params = [{transform_indices = @transform_0, window_bounds = array<i64: 8, 32>}, {transform_indices = @transform_1, window_bounds = array<i64: 8, 1>}, {transform_indices = @transform_2, window_bounds = array<i64: 8, 128>}, {transform_indices = @transform_3, window_bounds = array<i64: 8, 128>}]} {
    %c1_i32 = arith.constant 1 : i32
    %0 = arith.muli %arg0, %c1_i32 : i32
    %1 = arith.addi %0, %arg1 : i32
    %c0_i32 = arith.constant 0 : i32
    %2 = arith.cmpi eq, %arg1, %c0_i32 : i32
    %c0_i32_0 = arith.constant 0 : i32
    %3 = arith.cmpi eq, %arg2, %c0_i32_0 : i32
    %4 = arith.andi %2, %3 : i1
    %5 = arith.extui %4 : i1 to i32
    %c0_i32_1 = arith.constant 0 : i32
    %6 = arith.cmpi ne, %5, %c0_i32_1 : i32
    scf.if %6 {
      %cst = arith.constant 0.000000e+00 : f32
      %13 = vector.broadcast %cst : f32 to vector<8x128xf32>
      %c0 = arith.constant 0 : index
      %c0_6 = arith.constant 0 : index
      %14 = vector.load %arg5[%c0, %c0_6] : memref<8x128xf32, #tpu.memory_space<vmem>>, vector<8x128xf32>
      tpu.vector_store %arg5[%c0, %c0_6], %13 {strides = array<i32>} : memref<8x128xf32, #tpu.memory_space<vmem>>, vector<8x128xf32>,
      %cst_7 = arith.constant 0.000000e+00 : f32
      %15 = vector.broadcast %cst_7 : f32 to vector<8x128xf32>
      %c0_8 = arith.constant 0 : index
      %c0_9 = arith.constant 0 : index
      %16 = vector.load %arg6[%c0_8, %c0_9] : memref<8x128xf32, #tpu.memory_space<vmem>>, vector<8x128xf32>
      tpu.vector_store %arg6[%c0_8, %c0_9], %15 {strides = array<i32>} : memref<8x128xf32, #tpu.memory_space<vmem>>, vector<8x128xf32>,
    } else {
    }
    %c0_i32_2 = arith.constant 0 : i32
    %7 = arith.cmpi eq, %arg2, %c0_i32_2 : i32
    %8 = arith.extui %7 : i1 to i32
    %c0_i32_3 = arith.constant 0 : i32
    %9 = arith.cmpi ne, %8, %c0_i32_3 : i32
    scf.if %9 {
      %cst = arith.constant 0.000000e+00 : f32
      %13 = vector.broadcast %cst : f32 to vector<8x1xf32>
      %c0 = arith.constant 0 : index
      %c0_6 = arith.constant 0 : index
      %14 = vector.load %arg7[%c0, %c0_6] : memref<8x1xf32, #tpu.memory_space<vmem>>, vector<8x1xf32>
      tpu.vector_store %arg7[%c0, %c0_6], %13 {strides = array<i32>} : memref<8x1xf32, #tpu.memory_space<vmem>>, vector<8x1xf32>,
      %cst_7 = arith.constant 0.000000e+00 : f32
      %15 = vector.broadcast %cst_7 : f32 to vector<8x1xf32>
      %c0_8 = arith.constant 0 : index
      %c0_9 = arith.constant 0 : index
      %16 = vector.load %arg8[%c0_8, %c0_9] : memref<8x1xf32, #tpu.memory_space<vmem>>, vector<8x1xf32>
      tpu.vector_store %arg8[%c0_8, %c0_9], %15 {strides = array<i32>} : memref<8x1xf32, #tpu.memory_space<vmem>>, vector<8x1xf32>,
    } else {
    }
    %c1_i32_4 = arith.constant 1 : i32
    %10 = arith.cmpi slt, %1, %c1_i32_4 : i32
    %11 = arith.extui %10 : i1 to i32
    %c0_i32_5 = arith.constant 0 : i32
    %12 = arith.cmpi ne, %11, %c0_i32_5 : i32
    scf.if %12 {
      %c0 = arith.constant 0 : index
      %c0_6 = arith.constant 0 : index
      %13 = vector.load %arg3[%c0, %c0_6] : memref<8x32xf32, #tpu.memory_space<vmem>>, vector<8x32xf32>
      %cst = arith.constant 1.000000e+00 : f32
      %14 = vector.broadcast %cst : f32 to vector<8x32xf32>
      %15 = arith.addf %14, %13 : vector<8x32xf32>
      %16 = arith.mulf %13, %13 : vector<8x32xf32>
      %cst_7 = arith.constant 5.000000e-01 : f32
      %17 = vector.broadcast %cst_7 : f32 to vector<8x32xf32>
      %18 = arith.mulf %16, %17 : vector<8x32xf32>
      %19 = arith.addf %15, %18 : vector<8x32xf32>
      %c0_8 = arith.constant 0 : index
      %c0_9 = arith.constant 0 : index
      %20 = vector.load %arg4[%c0_8, %c0_9] : memref<8x1xi32, #tpu.memory_space<vmem>>, vector<8x1xi32>
      %21 = tpu.iota {dimensions = array<i32: 1>} : vector<8x32xi32>
      %c32_i32 = arith.constant 32 : i32
      %22 = arith.muli %arg2, %c32_i32 : i32
      %23 = vector.broadcast %22 : i32 to vector<8x32xi32>
      %24 = arith.addi %21, %23 : vector<8x32xi32>
      %c0_10 = arith.constant 0 : index
      %c0_11 = arith.constant 0 : index
      %25 = vector.load %arg7[%c0_10, %c0_11] : memref<8x1xf32, #tpu.memory_space<vmem>>, vector<8x1xf32>
      %cst_12 = arith.constant dense<0.000000e+00> : vector<8xf32>
      %26 = vector.multi_reduction <add>, %19, %cst_12 [1] : vector<8x32xf32> to vector<8xf32>
      %27 = vector.shape_cast %26 : vector<8xf32> to vector<8x1xf32>
      %28 = arith.addf %25, %27 : vector<8x1xf32>
      %c0_13 = arith.constant 0 : index
      %c0_14 = arith.constant 0 : index
      %29 = vector.load %arg7[%c0_13, %c0_14] : memref<8x1xf32, #tpu.memory_space<vmem>>, vector<8x1xf32>
      tpu.vector_store %arg7[%c0_13, %c0_14], %28 {strides = array<i32>} : memref<8x1xf32, #tpu.memory_space<vmem>>, vector<8x1xf32>,
      %c0_15 = arith.constant 0 : index
      %c0_16 = arith.constant 0 : index
      %30 = vector.load %arg8[%c0_15, %c0_16] : memref<8x1xf32, #tpu.memory_space<vmem>>, vector<8x1xf32>
      %31 = vector.broadcast %20 : vector<8x1xi32> to vector<8x32xi32>
      %32 = arith.cmpi eq, %24, %31 : vector<8x32xi32>
      %cst_17 = arith.constant 0.000000e+00 : f32
      %33 = vector.broadcast %cst_17 : f32 to vector<8x32xf32>
      %34 = arith.select %32, %19, %33 : vector<8x32xi1>, vector<8x32xf32>
      %cst_18 = arith.constant dense<0.000000e+00> : vector<8xf32>
      %35 = vector.multi_reduction <add>, %34, %cst_18 [1] : vector<8x32xf32> to vector<8xf32>
      %36 = vector.shape_cast %35 : vector<8xf32> to vector<8x1xf32>
      %37 = arith.addf %30, %36 : vector<8x1xf32>
      %c0_19 = arith.constant 0 : index
      %c0_20 = arith.constant 0 : index
      %38 = vector.load %arg8[%c0_19, %c0_20] : memref<8x1xf32, #tpu.memory_space<vmem>>, vector<8x1xf32>
      tpu.vector_store %arg8[%c0_19, %c0_20], %37 {strides = array<i32>} : memref<8x1xf32, #tpu.memory_space<vmem>>, vector<8x1xf32>,
      %c0_i32_21 = arith.constant 0 : i32
      %39 = arith.cmpi eq, %arg2, %c0_i32_21 : i32
      %40 = arith.extui %39 : i1 to i32
      %c0_i32_22 = arith.constant 0 : i32
      %41 = arith.cmpi ne, %40, %c0_i32_22 : i32
      scf.if %41 {
        %c-1_i32 = arith.constant -1 : i32
        %42 = vector.broadcast %c-1_i32 : i32 to vector<8x1xi32>
        %43 = arith.cmpi ne, %20, %42 : vector<8x1xi32>
        %c0_23 = arith.constant 0 : index
        %c0_24 = arith.constant 0 : index
        %44 = vector.load %arg8[%c0_23, %c0_24] : memref<8x1xf32, #tpu.memory_space<vmem>>, vector<8x1xf32>
        %cst_25 = arith.constant 0.000000e+00 : f32
        %45 = vector.broadcast %cst_25 : f32 to vector<8x1xf32>
        %46 = arith.cmpf ogt, %44, %45 : vector<8x1xf32>
        %47 = arith.andi %43, %46 : vector<8x1xi1>
        %cst_26 = arith.constant 1.000000e+00 : f32
        %48 = vector.broadcast %cst_26 : f32 to vector<8x1xf32>
        %49 = arith.select %47, %44, %48 : vector<8x1xi1>, vector<8x1xf32>
        %50 = math.log %49 : vector<8x1xf32>
        %c0_27 = arith.constant 0 : index
        %c0_28 = arith.constant 0 : index
        %51 = vector.load %arg7[%c0_27, %c0_28] : memref<8x1xf32, #tpu.memory_space<vmem>>, vector<8x1xf32>
        %52 = math.log %51 : vector<8x1xf32>
        %53 = arith.subf %50, %52 : vector<8x1xf32>
        %cst_29 = arith.constant 0.000000e+00 : f32
        %54 = vector.broadcast %cst_29 : f32 to vector<8x1xf32>
        %55 = arith.subf %54, %53 : vector<8x1xf32>
        %cst_30 = arith.constant 0.000000e+00 : f32
        %56 = vector.broadcast %cst_30 : f32 to vector<8x1xf32>
        %57 = arith.select %47, %55, %56 : vector<8x1xi1>, vector<8x1xf32>
        %58 = vector.shape_cast %57 : vector<8x1xf32> to vector<1x8x1xf32>
        %cst_31 = arith.constant dense<0.000000e+00> : vector<1xf32>
        %59 = vector.multi_reduction <add>, %58, %cst_31 [1, 2] : vector<1x8x1xf32> to vector<1xf32>
        %60 = vector.shape_cast %59 : vector<1xf32> to vector<1x1x1xf32>
        %61 = vector.extract %60[0, 0, 0] : f32 from vector<1x1x1xf32>
        %62 = vector.broadcast %61 : f32 to vector<1x1xf32>
        %63 = arith.extui %43 : vector<8x1xi1> to vector<8x1xi32>
        %64 = arith.sitofp %63 : vector<8x1xi32> to vector<8x1xf32>
        %65 = vector.shape_cast %64 : vector<8x1xf32> to vector<1x8x1xf32>
        %cst_32 = arith.constant dense<0.000000e+00> : vector<1xf32>
        %66 = vector.multi_reduction <add>, %65, %cst_32 [1, 2] : vector<1x8x1xf32> to vector<1xf32>
        %67 = vector.shape_cast %66 : vector<1xf32> to vector<1x1x1xf32>
        %68 = vector.extract %67[0, 0, 0] : f32 from vector<1x1x1xf32>
        %69 = vector.broadcast %68 : f32 to vector<1x1xf32>
        %c0_33 = arith.constant 0 : index
        %c0_34 = arith.constant 0 : index
        %70 = vector.load %arg5[%c0_33, %c0_34] : memref<8x128xf32, #tpu.memory_space<vmem>>, vector<8x128xf32>
        %71 = vector.shape_cast %62 : vector<1x1xf32> to vector<1x1xf32>
        %72 = vector.broadcast %71 : vector<1x1xf32> to vector<8x128xf32>
        %73 = arith.addf %70, %72 : vector<8x128xf32>
        %c0_35 = arith.constant 0 : index
        %c0_36 = arith.constant 0 : index
        %74 = vector.load %arg5[%c0_35, %c0_36] : memref<8x128xf32, #tpu.memory_space<vmem>>, vector<8x128xf32>
        tpu.vector_store %arg5[%c0_35, %c0_36], %73 {strides = array<i32>} : memref<8x128xf32, #tpu.memory_space<vmem>>, vector<8x128xf32>,
        %c0_37 = arith.constant 0 : index
        %c0_38 = arith.constant 0 : index
        %75 = vector.load %arg6[%c0_37, %c0_38] : memref<8x128xf32, #tpu.memory_space<vmem>>, vector<8x128xf32>
        %76 = vector.shape_cast %69 : vector<1x1xf32> to vector<1x1xf32>
        %77 = vector.broadcast %76 : vector<1x1xf32> to vector<8x128xf32>
        %78 = arith.addf %75, %77 : vector<8x128xf32>
        %c0_39 = arith.constant 0 : index
        %c0_40 = arith.constant 0 : index
        %79 = vector.load %arg6[%c0_39, %c0_40] : memref<8x128xf32, #tpu.memory_space<vmem>>, vector<8x128xf32>
        tpu.vector_store %arg6[%c0_39, %c0_40], %78 {strides = array<i32>} : memref<8x128xf32, #tpu.memory_space<vmem>>, vector<8x128xf32>,
      } else {
      }
    } else {
    }
    return
  }
  func.func @transform_0(%arg0: i32, %arg1: i32, %arg2: i32) -> (i32, i32) {
    %c1_i32 = arith.constant 1 : i32
    %0 = arith.muli %arg0, %c1_i32 : i32
    %1 = arith.addi %0, %arg1 : i32
    %c0_i32 = arith.constant 0 : i32
    %2 = arith.minsi %1, %c0_i32 : i32
    %c0_i32_0 = arith.constant 0 : i32
    return %2, %arg2 : i32, i32
  }
  func.func @transform_1(%arg0: i32, %arg1: i32, %arg2: i32) -> (i32, i32) {
    %c1_i32 = arith.constant 1 : i32
    %0 = arith.muli %arg0, %c1_i32 : i32
    %1 = arith.addi %0, %arg1 : i32
    %c0_i32 = arith.constant 0 : i32
    %2 = arith.minsi %1, %c0_i32 : i32
    %c0_i32_0 = arith.constant 0 : i32
    %c0_i32_1 = arith.constant 0 : i32
    return %2, %c0_i32_0 : i32, i32
  }
  func.func @transform_2(%arg0: i32, %arg1: i32, %arg2: i32) -> (i32, i32) {
    %c0_i32 = arith.constant 0 : i32
    %c0_i32_0 = arith.constant 0 : i32
    return %arg0, %c0_i32 : i32, i32
  }
  func.func @transform_3(%arg0: i32, %arg1: i32, %arg2: i32) -> (i32, i32) {
    %c0_i32 = arith.constant 0 : i32
    %c0_i32_0 = arith.constant 0 : i32
    return %arg0, %c0_i32 : i32, i32
  }
}

</mosaic_0001>

<bundles_post_ra>
// kernel: tpu_custom_call.1
= control target key start
LH: loop header
LB: loop body
LE: loop exit
PB: predicated region body
PF: predicated region fallthrough
CT: control target
= control target key end

     0   :  { %9 = vsyncpa [#allocation5], 0  ;;  %s318_s0 = inlined_call_operand.vmem [shape: f32[8,32], index: 0, kind: input, shape index: {}]   ;;  %s319_s1 = inlined_call_operand.vmem [shape: s32[8,1], index: 1, kind: input, shape index: {}]   ;;  %s320_s2 = inlined_call_operand.hbm [shape: f32[8,128], index: 2, kind: output, shape index: {0}]   ;;  %s321_s3 = inlined_call_operand.hbm [shape: f32[8,128], index: 3, kind: output, shape index: {1}]  }
   0x1   :  { %v93_v0 = vld [vmem:[%s319_s1] sm:$0xff] }
   0x2   :  { %10 = vsyncpa [#allocation7], 0  ;;  %v274_v1 = vmov 0   ;;  %v88_v2 = vld [vmem:[%s318_s0] sm:$0xff]  ;;  %vm100_vm0 = vcmask 261120   ;;  %v94_v8 = vlaneseq  ;;  %vm81_vm2 = vcmask 7168  }
   0x3   :  { %217 = vset.pattern.permute.xlu0 %v274_v1  ;;  %v90_v3 = vmul.f32 %v88_v2, %v88_v2  ;;  %v89_v4 = vadd.f32 1.0, %v88_v2  ;;  %v275_v13 = vmov 0.0   ;;  %vm121_vm3 = vcmp.ne.s32.totalorder %v93_v0, 4294967295  ;;  %s276_s0 = smov [#allocation4]   ;;  %s171_s18 = sshll.u32 %s320_s2, 4  ;;  %s172_s18 = int_to_ptr.hbm [resolvable:$true] %s171_s18 }
   0x4   :  { %109 = vperm.xlu0 %217, %v93_v0   ;;  %v95_v9 = vand.u32 127, %v94_v8  ;;  %83 = vst.msk [vmem:[#allocation3] sm:$0xff] %vm81_vm2, %v275_v13  ;;  %v208_v16 = vsel %vm121_vm3, 1.0, %v275_v13  ;;  %s169_s1 = sshll.u32 %s276_s0, 4  ;;  %s277_s19 = smov [#allocation6]   ;;  %s170_s1 = int_to_ptr.vmem [resolvable:$true] %s169_s1 }
   0x5   :  { %v91_v5 = vmul.f32 0.5, %v90_v3  ;;  %82 = vst.msk [vmem:[#allocation2] sm:$0xff] %vm81_vm2, %v275_v13  ;;  %v146_v18 = vsel %vm81_vm2, %v208_v16, 0.0  ;;  %s180_s20 = sshll.u32 %s277_s19, 4  ;;  %s182_s24 = sshll.u32 %s321_s3, 4  ;;  %s181_s20 = int_to_ptr.vmem [resolvable:$true] %s180_s20  ;;  %s183_s24 = int_to_ptr.hbm [resolvable:$true] %s182_s24 }
   0x6   :  { %147 = vadd.xlane.f32.xlu2 %v146_v18 }
   0x7   :  { %v92_v6 = vadd.f32 %v91_v5, %v89_v4 }
   0x9   :  { %v101_v7 = vsel %vm100_vm0, %v92_v6, 0.0 }
   0xa   :  { %102 = vadd.xlane.f32.xlu1 %v101_v7 }
   0xb   :  { %v107_v19 = vld [vmem:[#allocation3] sm:$0xff] }
   0xc   :  { %v99_v15 = vld [vmem:[#allocation2] sm:$0xff] }
  0x76   :  { %v110_v10 = vpop.permute.xlu0 %109 }
  0x77   :  { %vm111_vm1 = vcmp.eq.s32.totalorder %v95_v9, %v110_v10 }
  0x78   :  { %v112_v11 = vsel %vm111_vm1, %v92_v6, 0.0 }
  0x79   :  { %v113_v12 = vsel %vm100_vm0, %v112_v11, 0.0  ;;  %v148_v33 = vpop.xlane.xlu2 %147 }
  0x7a   :  { %114 = vadd.xlane.f32.xlu0 %v113_v12  ;;  %v149_v34 = vrot.slane %v148_v33, 4 }
  0x7c   :  { %v150_v35 = vadd.f32 %v149_v34, %v148_v33 }
  0x7d   :  { %v103_v14 = vpop.xlane.xlu1 %102 }
  0x7e   :  { %v104_v17 = vadd.f32 %v103_v14, %v99_v15  ;;  %v151_v36 = vrot.slane %v150_v35, 2 }
  0x80   :  { %106 = vst.msk [vmem:[#allocation2] sm:$0xff] %vm81_vm2, %v104_v17  ;;  %v152_v40 = vadd.f32 %v151_v36, %v150_v35 }
  0x82   :  { %v153_v43 = vrot.slane %v152_v40, 1 }
  0x84   :  { %v154_v46 = vadd.f32 %v153_v43, %v152_v40 }
  0x87   :  { %v128_v22 = vld [vmem:[#allocation2] sm:$0xff] }
  0x88   :  { %218 = vlog2.f32 %v128_v22 }
  0x8e   :  { %v219_v25 = vpop.eup %218 }
  0x8f   :  { %v130_v26 = vmul.f32 0.6931472, %v219_v25 }
  0xed   :  { %v115_v20 = vpop.xlane.xlu0 %114 }
  0xee   :  { %v116_v21 = vadd.f32 %v115_v20, %v107_v19 }
  0xf0   :  { %117 = vst.msk [vmem:[#allocation3] sm:$0xff] %vm81_vm2, %v116_v21 }
  0xf7   :  { %v122_v23 = vld [vmem:[#allocation3] sm:$0xff] }
  0xf8   :  { %vm123_vm4 = vcmp.gt.f32.partialorder %v122_v23, 0.0 }
  0xf9   :  { %vm124_vm5 = vmand %vm121_vm3, %vm123_vm4 }
  0xfa   :  { %v125_v24 = vsel %vm124_vm5, %v122_v23, 1.0 }
  0xfb   :  { %220 = vlog2.f32 %v125_v24 }
 0x101   :  { %v221_v27 = vpop.eup %220 }
 0x102   :  { %v127_v28 = vmul.f32 0.6931472, %v221_v27 }
 0x104   :  { %v131_v29 = vsub.f32 %v127_v28, %v130_v26 }
 0x106   :  { %v132_v30 = vsub.f32 0.0, %v131_v29 }
 0x108   :  { %v133_v31 = vsel %vm124_vm5, %v132_v30, 0.0 }
 0x109   :  { %v134_v32 = vsel %vm81_vm2, %v133_v31, 0.0 }
 0x10a   :  { %135 = vadd.xlane.f32.xlu1 %v134_v32 }
 0x17d   :  { %v136_v37 = vpop.xlane.xlu1 %135 }
 0x17e   :  { %v137_v38 = vrot.slane %v136_v37, 4 }
 0x180   :  { %v138_v39 = vadd.f32 %v137_v38, %v136_v37 }
 0x182   :  { %v139_v41 = vrot.slane %v138_v39, 2 }
 0x184   :  { %v140_v42 = vadd.f32 %v139_v41, %v138_v39 }
 0x186   :  { %v141_v44 = vrot.slane %v140_v42, 1 }
 0x188   :  { %v142_v45 = vadd.f32 %v141_v44, %v140_v42 }
 0x18a   :  { %209 = vpush %v142_v45 }
 0x18b   :  { %211 = vpush %v154_v46 }
 0x1bb   :  { %s210_s21 = spop %209 }
 0x1bc   :  { %v157_v47 = vstv %s210_s21  ;;  %s212_s25 = spop %211 }
 0x1bd   :  { %v161_v48 = vstv %s212_s25  ;;  %159 = vst [vmem:[#allocation4] sm:$0xff] %v157_v47 }
 0x1be   :  { %163 = vst [vmem:[#allocation6] sm:$0xff] %v161_v48  ;;  %174 = dma.vmem_to_hbm [thread:$0]  %s170_s1, 128, %s172_s18, [#allocation5]  }
 0x1bf   :  { %185 = dma.vmem_to_hbm [thread:$0]  %s181_s20, 128, %s183_s24, [#allocation7]  }
 0x1c0   :  { %270 = dma.done.wait [#allocation5], 128  }
 0x1c1   :  { %271 = vsyncadd [#allocation5], 4294967168 }
 0x1c2   :  { %272 = dma.done.wait [#allocation7], 128  }
 0x1c3   :  { %273 = vsyncadd [#allocation7], 4294967168 }
 0x1c4   :  { %194 = vsyncpa [#allocation5], 1 }
 0x1c5   :  { %195 = vsyncpa [#allocation7], 1 }

</bundles_post_ra>
